<compile_context>
chip_gen: v6e
topology: v6e:2x2x1
jax: 0.10.0
libtpu: 0.0.40
codegen_flags: <defaults>
</compile_context>

<pallas_src>
import math

import jax
import jax.numpy as jnp
from jax.experimental import pallas as pl
from jax.experimental.pallas import tpu as pltpu

# --- small config (mirrors Config fields, scaled down; C = n_heads * d_head) ---
B = 2
T = 16                      # sequence length (<= n_ctx)
D_EMBD = 128                # lane-dense embedding width (multiple of 128)
N_HEADS = 4
D_HEAD = D_EMBD // N_HEADS  # 32


def self_attention_kernel(x_ref, w_qkv_ref, b_qkv_ref, w_o_ref, b_o_ref, o_ref):
    # One batch element per grid step: x_ref block is (1, T, C) float32.
    x = x_ref[...]
    _, t, c = x.shape
    xb = x.reshape(t, c).astype(jnp.bfloat16)   # bf16 MXU operands, f32 accumulate

    # --- fused qkv projection: one (T, C) @ (C, 3C) matmul ---
    qkv = jnp.dot(xb, w_qkv_ref[...], preferred_element_type=jnp.float32)
    qkv = qkv + b_qkv_ref[...]

    # lane-aligned 128-wide splits (C == 128, so no relayout copies)
    q = qkv[:, 0 * c:1 * c]
    k = qkv[:, 1 * c:2 * c]
    v = qkv[:, 2 * c:3 * c]

    # --- multi-head reshape: (T, C) -> (H, T, D) ---
    qh = q.reshape(t, N_HEADS, D_HEAD).transpose(1, 0, 2)
    kh = k.reshape(t, N_HEADS, D_HEAD).transpose(1, 0, 2)
    vh = v.reshape(t, N_HEADS, D_HEAD).transpose(1, 0, 2)

    # --- batched-over-heads attention scores: (H, T, T) ---
    att = jnp.einsum('htd,hsd->hts',
                     qh.astype(jnp.bfloat16), kh.astype(jnp.bfloat16),
                     preferred_element_type=jnp.float32)
    att = att * (1.0 / math.sqrt(D_HEAD))

    # causal mask (large finite negative: NaN-safe, same softmax result)
    rows = jax.lax.broadcasted_iota(jnp.int32, (t, t), 0)
    cols = jax.lax.broadcasted_iota(jnp.int32, (t, t), 1)
    att = jnp.where((rows >= cols)[None, :, :], att, -1e30)

    # numerically-stable softmax; reciprocal on the EUP (approx)
    att = att - jnp.max(att, axis=-1, keepdims=True)
    p = jnp.exp(att)
    inv_denom = pl.reciprocal(jnp.sum(p, axis=-1, keepdims=True), approx=True)
    p = p * inv_denom

    # --- weighted values: (H, T, D) -> (T, C) ---
    y = jnp.einsum('hts,hsd->htd',
                   p.astype(jnp.bfloat16), vh.astype(jnp.bfloat16),
                   preferred_element_type=jnp.float32)
    y2 = y.transpose(1, 0, 2).reshape(t, c)

    # --- output projection (c_proj) ---
    out = jnp.dot(y2.astype(jnp.bfloat16), w_o_ref[...],
                  preferred_element_type=jnp.float32) + b_o_ref[...]
    o_ref[...] = out.reshape(1, t, c)


def self_attention(x, params):
    """Fused causal self-attention.  x: (B, T, C) f32 -> (B, T, C) f32."""
    bsz, t, c = x.shape

    # bf16 weight operands (one-time host-side cast); biases stay f32.
    w_qkv = params['w_qkv'].astype(jnp.bfloat16)   # (C, 3C)
    w_o = params['w_o'].astype(jnp.bfloat16)       # (C, C)
    b_qkv, b_o = params['b_qkv'], params['b_o']    # (1, 3C), (1, C)

    def const2d(shape):
        # full-array block, same block index every grid step (no re-DMA)
        return pl.BlockSpec(shape, lambda b: (0, 0))

    in_specs = [
        pl.BlockSpec((1, t, c), lambda b: (b, 0, 0)),   # x: one batch element
        const2d((c, 3 * c)),                            # w_qkv
        const2d((1, 3 * c)),                            # b_qkv
        const2d((c, c)),                                # w_o
        const2d((1, c)),                                # b_o
    ]

    return pl.pallas_call(
        self_attention_kernel,
        out_shape=jax.ShapeDtypeStruct((bsz, t, c), jnp.float32),
        grid=(bsz,),
        in_specs=in_specs,
        out_specs=pl.BlockSpec((1, t, c), lambda b: (b, 0, 0)),
        compiler_params=pltpu.CompilerParams(
            dimension_semantics=("parallel",)),   # both TCs busy on v7x
    )(x, w_qkv, b_qkv, w_o, b_o)


def self_attention_ref(x, params):
    """Pure-JAX f32 reference matching the PyTorch module exactly."""
    bsz, t, c = x.shape
    qkv = x @ params['w_qkv'] + params['b_qkv']
    q, k, v = qkv[..., :c], qkv[..., c:2 * c], qkv[..., 2 * c:]
    q = q.reshape(bsz, t, N_HEADS, D_HEAD).transpose(0, 2, 1, 3)
    k = k.reshape(bsz, t, N_HEADS, D_HEAD).transpose(0, 2, 1, 3)
    v = v.reshape(bsz, t, N_HEADS, D_HEAD).transpose(0, 2, 1, 3)
    att = (q @ k.transpose(0, 1, 3, 2)) * (1.0 / math.sqrt(D_HEAD))
    mask = jnp.tril(jnp.ones((t, t), dtype=bool))
    att = jnp.where(mask[None, None, :, :], att, -jnp.inf)
    att = jax.nn.softmax(att, axis=-1)
    y = att @ v
    y = y.transpose(0, 2, 1, 3).reshape(bsz, t, c)
    return y @ params['w_o'] + params['b_o']


def init_params(key):
    std = 0.02
    k_qkv, k_o, kb_qkv, kb_o = jax.random.split(key, 4)
    C = D_EMBD
    return {
        # nn.Linear weights stored transposed: (in, out), so y = x @ W + b
        'w_qkv': jax.random.normal(k_qkv, (C, 3 * C), jnp.float32) * std,
        'b_qkv': jax.random.normal(kb_qkv, (1, 3 * C), jnp.float32) * std,
        'w_o':   jax.random.normal(k_o, (C, C), jnp.float32) * std,
        'b_o':   jax.random.normal(kb_o, (1, C), jnp.float32) * std,
    }


if __name__ == "__main__":
    key = jax.random.PRNGKey(0)
    k_param, k_x = jax.random.split(key)
    params = init_params(k_param)
    x = jax.random.normal(k_x, (B, T, D_EMBD), jnp.float32)

    out = self_attention(x, params)
    jax.block_until_ready(out)

    assert out.shape == (B, T, D_EMBD), out.shape
    assert bool(jnp.all(jnp.isfinite(out)))

    # loose tolerance: bf16 MXU operands + approximate reciprocal vs f32 ref
    ref = self_attention_ref(x, params)
    err = float(jnp.max(jnp.abs(out - ref)))
    scale = float(jnp.max(jnp.abs(ref))) + 1e-6
    assert err <= 0.05 * scale + 1e-3, (err, scale)

    print("KERNEL_OK")
</pallas_src>

<mosaic_0001>
module attributes {stable_mosaic.version = 11 : i64} {
  func.func @self_attention_kernel(%arg0: i32, %arg1: memref<1x16x128xf32, #tpu.memory_space<vmem>>, %arg2: memref<128x384xbf16, #tpu.memory_space<vmem>>, %arg3: memref<1x384xf32, #tpu.memory_space<vmem>>, %arg4: memref<128x128xbf16, #tpu.memory_space<vmem>>, %arg5: memref<1x128xf32, #tpu.memory_space<vmem>>, %arg6: memref<1x16x128xf32, #tpu.memory_space<vmem>>) attributes {dimension_semantics = [#tpu.dimension_semantics<parallel>], iteration_bounds = array<i64: 2>, scalar_prefetch = 0 : i64, scratch_operands = 0 : i64, tpu.core_type = #tpu.core_type<tc>, window_params = [{transform_indices = @transform_0, window_bounds = array<i64: 1, 16, 128>}, {pipeline_mode = #tpu.pipeline_mode<synchronous>, transform_indices = @transform_1, window_bounds = array<i64: 128, 384>}, {pipeline_mode = #tpu.pipeline_mode<synchronous>, transform_indices = @transform_2, window_bounds = array<i64: 1, 384>}, {pipeline_mode = #tpu.pipeline_mode<synchronous>, transform_indices = @transform_3, window_bounds = array<i64: 128, 128>}, {pipeline_mode = #tpu.pipeline_mode<synchronous>, transform_indices = @transform_4, window_bounds = array<i64: 1, 128>}, {transform_indices = @transform_5, window_bounds = array<i64: 1, 16, 128>}]} {
    %c0 = arith.constant 0 : index
    %c0_0 = arith.constant 0 : index
    %c0_1 = arith.constant 0 : index
    %0 = vector.load %arg1[%c0, %c0_0, %c0_1] : memref<1x16x128xf32, #tpu.memory_space<vmem>>, vector<1x16x128xf32>
    %1 = vector.shape_cast %0 : vector<1x16x128xf32> to vector<16x128xf32>
    %2 = arith.truncf %1 : vector<16x128xf32> to vector<16x128xbf16>
    %c0_2 = arith.constant 0 : index
    %c0_3 = arith.constant 0 : index
    %3 = vector.load %arg2[%c0_2, %c0_3] : memref<128x384xbf16, #tpu.memory_space<vmem>>, vector<128x384xbf16>
    %cst = arith.constant dense<0.000000e+00> : vector<16x384xf32>
    %4 = tpu.matmul %2, %3, %cst {dimension_numbers = #tpu.dot_dimension_numbers<[1], [0], [0], [1], [0, 0, 1, 1], [], []>} : vector<16x128xbf16>, vector<128x384xbf16>, vector<16x384xf32> -> vector<16x384xf32>
    %c0_4 = arith.constant 0 : index
    %c0_5 = arith.constant 0 : index
    %5 = vector.load %arg3[%c0_4, %c0_5] : memref<1x384xf32, #tpu.memory_space<vmem>>, vector<1x384xf32>
    %6 = vector.broadcast %5 : vector<1x384xf32> to vector<16x384xf32>
    %7 = arith.addf %4, %6 : vector<16x384xf32>
    %8 = vector.extract_strided_slice %7 {offsets = [0, 0], sizes = [16, 128], strides = [1, 1]} : vector<16x384xf32> to vector<16x128xf32>
    %9 = vector.extract_strided_slice %7 {offsets = [0, 128], sizes = [16, 128], strides = [1, 1]} : vector<16x384xf32> to vector<16x128xf32>
    %10 = vector.extract_strided_slice %7 {offsets = [0, 256], sizes = [16, 128], strides = [1, 1]} : vector<16x384xf32> to vector<16x128xf32>
    %11 = vector.shape_cast %8 : vector<16x128xf32> to vector<16x4x32xf32>
    %12 = tpu.transpose %11, [1, 0, 2] : vector<16x4x32xf32> -> vector<4x16x32xf32>
    %13 = vector.shape_cast %9 : vector<16x128xf32> to vector<16x4x32xf32>
    %14 = tpu.transpose %13, [1, 0, 2] : vector<16x4x32xf32> -> vector<4x16x32xf32>
    %15 = vector.shape_cast %10 : vector<16x128xf32> to vector<16x4x32xf32>
    %16 = tpu.transpose %15, [1, 0, 2] : vector<16x4x32xf32> -> vector<4x16x32xf32>
    %17 = arith.truncf %12 : vector<4x16x32xf32> to vector<4x16x32xbf16>
    %18 = arith.truncf %14 : vector<4x16x32xf32> to vector<4x16x32xbf16>
    "tpu.trace_start"() <{level = 10 : i32, message = "htd,hsd->hts"}> : () -> ()
    %cst_6 = arith.constant dense<0.000000e+00> : vector<4x16x16xf32>
    %19 = tpu.matmul %17, %18, %cst_6 {dimension_numbers = #tpu.dot_dimension_numbers<[2], [2], [1], [1], [0, 0, 0, 1, 1, 1], [0], [0]>} : vector<4x16x32xbf16>, vector<4x16x32xbf16>, vector<4x16x16xf32> -> vector<4x16x16xf32>
    "tpu.trace_stop"() : () -> ()
    %cst_7 = arith.constant 0.176776692 : f32
    %20 = vector.broadcast %cst_7 : f32 to vector<4x16x16xf32>
    %21 = arith.mulf %19, %20 : vector<4x16x16xf32>
    %22 = tpu.iota {dimensions = array<i32: 0>} : vector<16x16xi32>
    %23 = tpu.iota {dimensions = array<i32: 1>} : vector<16x16xi32>
    %24 = arith.cmpi sge, %22, %23 : vector<16x16xi32>
    %25 = vector.shape_cast %24 : vector<16x16xi1> to vector<1x16x16xi1>
    %cst_8 = arith.constant -1.000000e+30 : f32
    %26 = vector.shape_cast %25 : vector<1x16x16xi1> to vector<1x16x16xi1>
    %27 = vector.broadcast %26 : vector<1x16x16xi1> to vector<4x16x16xi1>
    %28 = vector.broadcast %cst_8 : f32 to vector<4x16x16xf32>
    %29 = arith.select %27, %21, %28 : vector<4x16x16xi1>, vector<4x16x16xf32>
    %cst_9 = arith.constant dense<0xFF800000> : vector<4x16xf32>
    %30 = vector.multi_reduction <maximumf>, %29, %cst_9 [2] : vector<4x16x16xf32> to vector<4x16xf32>
    %31 = vector.shape_cast %30 : vector<4x16xf32> to vector<4x16x1xf32>
    %32 = vector.broadcast %31 : vector<4x16x1xf32> to vector<4x16x16xf32>
    %33 = arith.subf %29, %32 : vector<4x16x16xf32>
    %34 = math.exp %33 : vector<4x16x16xf32>
    %cst_10 = arith.constant dense<0.000000e+00> : vector<4x16xf32>
    %35 = vector.multi_reduction <add>, %34, %cst_10 [2] : vector<4x16x16xf32> to vector<4x16xf32>
    %36 = vector.shape_cast %35 : vector<4x16xf32> to vector<4x16x1xf32>
    %37 = tpu.reciprocal %36 {approx = true} : vector<4x16x1xf32> -> vector<4x16x1xf32>
    %38 = vector.broadcast %37 : vector<4x16x1xf32> to vector<4x16x16xf32>
    %39 = arith.mulf %34, %38 : vector<4x16x16xf32>
    %40 = arith.truncf %39 : vector<4x16x16xf32> to vector<4x16x16xbf16>
    %41 = arith.truncf %16 : vector<4x16x32xf32> to vector<4x16x32xbf16>
    "tpu.trace_start"() <{level = 10 : i32, message = "hts,hsd->htd"}> : () -> ()
    %cst_11 = arith.constant dense<0.000000e+00> : vector<4x16x32xf32>
    %42 = tpu.matmul %40, %41, %cst_11 {dimension_numbers = #tpu.dot_dimension_numbers<[2], [1], [1], [2], [0, 0, 0, 1, 1, 2], [0], [0]>} : vector<4x16x16xbf16>, vector<4x16x32xbf16>, vector<4x16x32xf32> -> vector<4x16x32xf32>
    "tpu.trace_stop"() : () -> ()
    %43 = tpu.transpose %42, [1, 0, 2] : vector<4x16x32xf32> -> vector<16x4x32xf32>
    %44 = vector.shape_cast %43 : vector<16x4x32xf32> to vector<16x128xf32>
    %45 = arith.truncf %44 : vector<16x128xf32> to vector<16x128xbf16>
    %c0_12 = arith.constant 0 : index
    %c0_13 = arith.constant 0 : index
    %46 = vector.load %arg4[%c0_12, %c0_13] : memref<128x128xbf16, #tpu.memory_space<vmem>>, vector<128x128xbf16>
    %cst_14 = arith.constant dense<0.000000e+00> : vector<16x128xf32>
    %47 = tpu.matmul %45, %46, %cst_14 {dimension_numbers = #tpu.dot_dimension_numbers<[1], [0], [0], [1], [0, 0, 1, 1], [], []>} : vector<16x128xbf16>, vector<128x128xbf16>, vector<16x128xf32> -> vector<16x128xf32>
    %c0_15 = arith.constant 0 : index
    %c0_16 = arith.constant 0 : index
    %48 = vector.load %arg5[%c0_15, %c0_16] : memref<1x128xf32, #tpu.memory_space<vmem>>, vector<1x128xf32>
    %49 = vector.broadcast %48 : vector<1x128xf32> to vector<16x128xf32>
    %50 = arith.addf %47, %49 : vector<16x128xf32>
    %51 = vector.shape_cast %50 : vector<16x128xf32> to vector<1x16x128xf32>
    %c0_17 = arith.constant 0 : index
    %c0_18 = arith.constant 0 : index
    %c0_19 = arith.constant 0 : index
    %52 = vector.load %arg6[%c0_17, %c0_18, %c0_19] : memref<1x16x128xf32, #tpu.memory_space<vmem>>, vector<1x16x128xf32>
    tpu.vector_store %arg6[%c0_17, %c0_18, %c0_19], %51 {strides = array<i32>} : memref<1x16x128xf32, #tpu.memory_space<vmem>>, vector<1x16x128xf32>,
    return
  }
  func.func @transform_0(%arg0: i32) -> (i32, i32, i32) {
    %c0_i32 = arith.constant 0 : i32
    %c0_i32_0 = arith.constant 0 : i32
    %c0_i32_1 = arith.constant 0 : i32
    return %arg0, %c0_i32, %c0_i32_0 : i32, i32, i32
  }
  func.func @transform_1(%arg0: i32) -> (i32, i32) {
    %c0_i32 = arith.constant 0 : i32
    %c0_i32_0 = arith.constant 0 : i32
    %c0_i32_1 = arith.constant 0 : i32
    return %c0_i32, %c0_i32_0 : i32, i32
  }
  func.func @transform_2(%arg0: i32) -> (i32, i32) {
    %c0_i32 = arith.constant 0 : i32
    %c0_i32_0 = arith.constant 0 : i32
    %c0_i32_1 = arith.constant 0 : i32
    return %c0_i32, %c0_i32_0 : i32, i32
  }
  func.func @transform_3(%arg0: i32) -> (i32, i32) {
    %c0_i32 = arith.constant 0 : i32
    %c0_i32_0 = arith.constant 0 : i32
    %c0_i32_1 = arith.constant 0 : i32
    return %c0_i32, %c0_i32_0 : i32, i32
  }
  func.func @transform_4(%arg0: i32) -> (i32, i32) {
    %c0_i32 = arith.constant 0 : i32
    %c0_i32_0 = arith.constant 0 : i32
    %c0_i32_1 = arith.constant 0 : i32
    return %c0_i32, %c0_i32_0 : i32, i32
  }
  func.func @transform_5(%arg0: i32) -> (i32, i32, i32) {
    %c0_i32 = arith.constant 0 : i32
    %c0_i32_0 = arith.constant 0 : i32
    %c0_i32_1 = arith.constant 0 : i32
    return %arg0, %c0_i32, %c0_i32_0 : i32, i32, i32
  }
}

</mosaic_0001>

<bundles_post_ra>
// kernel: tpu_custom_call.1
= control target key start
LH: loop header
LB: loop body
LE: loop exit
PB: predicated region body
PF: predicated region fallthrough
CT: control target
= control target key end

     0   :  { %10 = vsyncpa [#allocation3], 0  ;;  %s3556_s0 = inlined_call_operand.hbm [shape: f32[2,16,128], index: 0, kind: input, shape index: {}]   ;;  %s3557_s1 = inlined_call_operand.hbm [shape: bf16[128,384], index: 1, kind: input, shape index: {}]   ;;  %s3558_s2 = inlined_call_operand.vmem [shape: f32[1,384], index: 2, kind: input, shape index: {}]   ;;  %s3559_s3 = inlined_call_operand.hbm [shape: bf16[128,128], index: 3, kind: input, shape index: {}]   ;;  %s3560_s4 = inlined_call_operand.vmem [shape: f32[1,128], index: 4, kind: input, shape index: {}]   ;;  %s3561_s5 = inlined_call_operand.hbm [shape: f32[2,16,128], index: 5, kind: output, shape index: {}]  }
   0x1   :  { %12 = vsyncpa [#allocation3 + $0x1], 0 }
   0x2   :  { %13 = vsyncpa [#allocation6], 0 }
   0x3   :  { %14 = vsyncpa [#allocation4], 0 }
   0x4   :  { %16 = vsyncpa [#allocation4 + $0x1], 0  ;;  %s3004_s18 = smov 0   ;;  %s3006_s19 = smov 0  }
   0x5   :  { %s3008_s20 = smov 0   ;;  %s3010_s21 = smov 0  }
   0x6 LB: > { %s3025_s22 = sadd.s32 4294967295, %s2952_s21   ;;  %s2435_s23 = sadd.s32 4294967294, %s2952_s21   ;;  %s2952_s21 = sphi %s3010_s21, %s3583_s21   ;;  %s2948_s20 = sphi %s3008_s20, %s3582_s20   ;;  %s2944_s19 = sphi %s3006_s19, %s3581_s19   ;;  %s2940_s18 = sphi %s3004_s18, %s3580_s18  }
   0x7   : > { %p42_p0 = scmp.ne.s32.totalorder %s2944_s19, %s2940_s18  ;;  %p3562_p1 = scmp.eq.s32.totalorder %s3025_s22, 0 }
   0x8   : > { %p156_p3 = scmp.eq.s32.totalorder %s2435_s23, 1  ;;  %p2436_p5 = scmp.ge.s32.totalorder %s2952_s21, 1 }
   0x9   : > { %p3034_p4 = por %p3562_p1, %p42_p0  ;;  %p163_p7 = scmp.lt.s32.totalorder %s2952_s21, 3 }
   0xa   : > { %p3039_p6 = por %p156_p3, %p42_p0  ;;  %s2954_s27 = smov [#allocation5]  }
   0xb   : > { %s3566_s24 = scalar_select %p3034_p4, 1, 0 }
   0xc   : > { %s3567_s25 = scalar_select %p3039_p6, 1, 0 }
   0xd   : > { %p3044_p8 = pnand %p2436_p5, %p163_p7  ;;  %s175_s28 = sshll.u32 %s2954_s27, 4  ;;  %s176_s28 = int_to_ptr.vmem [resolvable:$true] %s175_s28 }
   0xe   : > { %s2955_s30 = smov [#allocation7]   ;;  %s2815_s7 = scalar_lea.vmem %s176_s28, 3072 }
   0xf   : > { %s3568_s26 = scalar_select %p3044_p8, 1, 0 }
  0x10   : > { %p2646_p9 = pneg %p3044_p8  ;;  %s191_s6 = sshll.u32 %s2955_s30, 4  ;;  %s192_s6 = int_to_ptr.vmem [resolvable:$true] %s191_s6 }
  0x11   : > { %p2816_p13 = scmp.ne.s32.totalorder %s176_s28, %s2815_s7  ;;  %p2823_p5 = scmp.lt.s32.totalorder %s176_s28, %s176_s28 }
  0x12   : > { %p3053_p11 = pnand %p2646_p9, %p3562_p1  ;;  %p2824_p7 = scmp.lt.s32.totalorder %s2815_s7, %s2815_s7 }
  0x14   : > { %p2806_p12 = pneg %p3053_p11  ;;  %p2825_p10 = por %p2824_p7, %p2823_p5 }
  0x16   : > { %p2818_p0 = pnand %p2816_p13, %p2806_p12 }
  0x18   : > { %p2819_p3 = pneg %p2818_p0 }
  0x1a   : > { %p2826_p9 = pnand %p2825_p10, %p2819_p3 }
  0x1c   : > { %2829 = shalt.err (!%p2826_p9)
}
  0x1d   : > { %s2956_s8 = smov 192   ;;  %s2957_s9 = smov 12  }
  0x1e   : > { %2649 = dma.hbm_to_vmem [thread:$0]  (!%p3053_p11), %s3557_s1, 3072, %s176_s28, [#allocation6], %s2956_s8, %s2956_s8, %s2957_s9  }
  0x1f   : > { %s2841_s12 = scalar_lea.vmem %s192_s6, 1024  ;;  %p2849_p2 = scmp.lt.s32.totalorder %s192_s6, %s192_s6 }
  0x20   : > { %p2842_p1 = scmp.ne.s32.totalorder %s192_s6, %s2841_s12  ;;  %p2850_p6 = scmp.lt.s32.totalorder %s2841_s12, %s2841_s12 }
  0x22   : > { %p2844_p13 = pnand %p2842_p1, %p2806_p12  ;;  %p2851_p5 = por %p2850_p6, %p2849_p2 }
  0x24   : > { %p2845_p0 = pneg %p2844_p13 }
  0x26   : > { %p2852_p10 = pnand %p2851_p5, %p2845_p0 }
  0x28   : > { %2855 = shalt.err (!%p2852_p10)
}
  0x29   : > { %s2958_s13 = smov 64   ;;  %s2959_s14 = smov 4  }
  0x2a   : > { %2652 = dma.hbm_to_vmem [thread:$0]  (!%p3053_p11), %s3559_s3, 1024, %s192_s6, [#allocation6], %s2958_s13, %s2958_s13, %s2959_s14  }
  0x2b   : > { %s3076_s17 = sadd.s32 1, %s2952_s21   ;;  %s29_s27 = sadd.s32 1, %s2948_s20 }
  0x2c   : > { %s26_s23 = ssub.s32 %s2952_s21, %s3076_s17  ;;  %p36_p2 = scmp.ne.s32.totalorder %s2948_s20, %s2944_s19 }
  0x2d   : > { %p27_p1 = scmp.eq.s32.totalorder %s26_s23, 0  ;;  %p37_p6 = scmp.eq.s32.totalorder %s2952_s21, 0 }
  0x2e   : > { %p3570_p3 = scmp.eq.s32.totalorder %s3025_s22, 1  ;;  %p2663_p9 = scmp.lt.s32.totalorder %s2952_s21, 2 }
  0x2f   : > { %s3085_s28 = scalar_select %p27_p1, %s2948_s20, %s29_s27  }
  0x30   : > { %p38_p12 = por %p37_p6, %p36_p2  ;;  %p3089_p7 = por %p3570_p3, %p36_p2 }
  0x31   : > { %s208_s29 = sand.u32 1, %s2948_s20   ;;  %s2510_s6 = sshll.u32 %s2952_s21, 8 }
  0x32   : > { %s3571_s30 = scalar_select %p3089_p7, 1, 0 }
  0x33   : > { %s2440_s7 = sshll.u32 %s208_s29, 4  ;;  %s3099_s10 = scalar_lea.hbm %s3556_s0, %s2510_s6 }
  0x34   : > { %s212_s11 = scalar_lea.vmem [#allocation2], %s2440_s7  ;;  %p3103_p11 = pnand %p2663_p9, %p38_p12 }
  0x35   : > { %s219_s12 = sshll.u32 %s212_s11, 4  ;;  %s3107_s14 = scalar_lea.sflag [#allocation3], %s208_s29  ;;  %s3101_s12 = int_to_ptr.vmem [resolvable:$true] %s219_s12 }
  0x36   : > { %s2856_s15 = scalar_lea.hbm %s3099_s10, 256  ;;  %p2858_p0 = pneg %p3103_p11 }
  0x37   : > { %p2857_p13 = scmp.ne.s32.totalorder %s3099_s10, %s2856_s15  ;;  %s2861_s27 = scalar_lea.hbm %s3556_s0, 512 }
  0x38   : > { %p2862_p1 = scmp.lt.s32.totalorder %s3099_s10, %s3556_s0  ;;  %p2863_p2 = scmp.lt.s32.totalorder %s2861_s27, %s2856_s15 }
  0x39   : > { %p2859_p5 = pnand %p2858_p0, %p2857_p13 }
  0x3a   : > { %p2864_p6 = por %p2863_p2, %p2862_p1 }
  0x3b   : > { %p2860_p10 = pneg %p2859_p5 }
  0x3d   : > { %p2865_p12 = pnand %p2864_p6, %p2860_p10 }
  0x3f   : > { %2868 = shalt.err (!%p2865_p12)
}
  0x40   : > { %s2869_s29 = scalar_lea.vmem %s3101_s12, 256  ;;  %s2960_s8 = smov [#allocation2]  }
  0x41   : > { %p2870_p3 = scmp.ne.s32.totalorder %s3101_s12, %s2869_s29  ;;  %s2874_s9 = sshll.u32 %s2960_s8, 4  ;;  %s2875_s9 = int_to_ptr.vmem [resolvable:$false] %s2874_s9 }
  0x42   : > { %s2876_s11 = scalar_lea.vmem %s2875_s9, 512  ;;  %p2877_p5 = scmp.lt.s32.totalorder %s3101_s12, %s2875_s9 }
  0x43   : > { %p2872_p9 = pnand %p2870_p3, %p2858_p0  ;;  %p2878_p7 = scmp.lt.s32.totalorder %s2876_s11, %s2869_s29 }
  0x45   : > { %p2873_p13 = pneg %p2872_p9  ;;  %p2879_p4 = por %p2878_p7, %p2877_p5 }
  0x47   : > { %p2880_p8 = pnand %p2879_p4, %p2873_p13 }
  0x49   : > { %2883 = shalt.err (!%p2880_p8)
}
  0x4a   : > { %s2961_s15 = smov 128   ;;  %s2962_s16 = smov 8  }
  0x4b   : > { %2656 = dma.hbm_to_vmem [thread:$0]  (!%p3103_p11), %s3099_s10, 256, %s3101_s12, %s3107_s14, %s2961_s15, %s2961_s15, %s2962_s16  }
  0x4c   : > { %p3573_p0 = scmp.ne.s32.totalorder %s3568_s26, 0 }
  0x4d   : > { %s3131_s23 = sand.u32 (!%p3573_p0), 1, %s2944_s19   ;;  %p3574_p4 = scmp.ne.s32.totalorder (!%p3573_p0), %s3566_s24, 0 }
  0x4e   : > { %231 = sbr.rel (%p3573_p0) target bundleno = 1608 (0x648), region = 40  ;;  %s2444_s27 = sshll.u32 (!%p3573_p0), %s3131_s23, 4 }
  0x4f   : > { %s234_s7 = scalar_lea.sflag (!%p3573_p0), [#allocation3], %s3131_s23  ;;  %s3137_s6 = scalar_lea.vmem (!%p3573_p0), [#allocation2], %s2444_s27 }
  0x53   : > { %2927 = dma.done.wait (%p3574_p4), %s234_s7, 256  }
  0x54   : > { %2929 = vsyncadd (%p3574_p4), %s234_s7, 4294967040  ;;  %p3575_p8 = scmp.eq.s32.totalorder %s3025_s22, 0 }
  0x56   : > { %2931 = dma.done.wait (%p3575_p8), [#allocation6], 4096   ;;  %p3576_p7 = pmov %p3575_p8 }
  0x57   : > { %v2963_v0 = vmov 0   ;;  %v2732_v1 = vld [vmem:[#allocation5 + $0xac] ss:$12 sps:$4 sm:$0xff]   ;;  %v2734_v2 = vld [vmem:[#allocation5 + $0xa8] ss:$12 sps:$4 sm:$0xff]   ;;  %v2964_v21 = vmov 0.0   ;;  %v310_v22 = vlaneseq }
  0x58   : > { %2933 = vsyncadd (%p3576_p7), [#allocation6], 4294963200  ;;  %485 = vmatprep.mubr.bf16.mxu0 %v2963_v0  ;;  %453 = vmatprep.subr.bf16.mxu0 %v2732_v1  ;;  %v2735_v3 = vld [vmem:[#allocation5 + $0x94] ss:$12 sps:$4 sm:$0xff]   ;;  %v2737_v4 = vld [vmem:[#allocation5 + $0x90] ss:$12 sps:$4 sm:$0xff]  }
  0x59   : > { %454 = vmatpush1.bf16.msra.mxu0 %v2734_v2  ;;  %v2738_v5 = vld [vmem:[#allocation5 + $0x7c] ss:$12 sps:$4 sm:$0xff]   ;;  %v2740_v6 = vld [vmem:[#allocation5 + $0x78] ss:$12 sps:$4 sm:$0xff]   ;;  %v2743_v8 = vld [vmem:[#allocation5 + $0x60] ss:$12 sps:$4 sm:$0xff]   ;;  %2546 = vmatprep.subr.bf16.mxu1 %v2964_v21 }
  0x5a   : > { %455 = vmatprep.subr.bf16.mxu0 %v2735_v3  ;;  %v2741_v7 = vld [vmem:[#allocation5 + $0x64] ss:$12 sps:$4 sm:$0xff]   ;;  %v2744_v9 = vld [vmem:[#allocation5 + $0x4c] ss:$12 sps:$4 sm:$0xff]   ;;  %v2746_v10 = vld [vmem:[#allocation5 + $0x48] ss:$12 sps:$4 sm:$0xff]  }
  0x5b   : > { %v2747_v11 = vld [vmem:[#allocation5 + $0x34] ss:$12 sps:$4 sm:$0xff]   ;;  %v2749_v12 = vld [vmem:[#allocation5 + $0x30] ss:$12 sps:$4 sm:$0xff]   ;;  %v2752_v14 = vld [vmem:[#allocation5 + $0x18] ss:$12 sps:$4 sm:$0xff]  }
  0x5c   : > { %v2750_v13 = vld [vmem:[#allocation5 + $0x1c] ss:$12 sps:$4 sm:$0xff]   ;;  %v2753_v15 = vld [vmem:[#allocation5 + $0x4] ss:$12 sps:$4 sm:$0xff]   ;;  %v2755_v16 = vld [vmem:[#allocation5] ss:$12 sps:$4 sm:$0xff]  }
  0x5d   : > { %456 = vmatpush1.bf16.msra.mxu0 %v2737_v4  ;;  %v273_v17 = vld [vmem:[%s3137_s6] sm:$0xff]  ;;  %v274_v18 = vld [vmem:[%s3137_s6 + $0x8] sm:$0xff]  ;;  %v3153_v23 = vshrl.u32 %v310_v22, 7  ;;  %s2965_s10 = smov 96   ;;  %s2966_s12 = smov 64   ;;  %vm2968_vm0 = vmmov 0  }
  0x5e   : > { %457 = vmatprep.subr.bf16.mxu0 %v2738_v5  ;;  %v275_v19 = vpack.c.bf16 %v274_v18, %v273_v17  ;;  %v2756_v20 = vld [vmem:[#allocation5 + $0xb0] ss:$12 sps:$4 sm:$0xff]   ;;  %v2757_v24 = vld [vmem:[#allocation5 + $0x98] ss:$12 sps:$4 sm:$0xff]   ;;  %v2758_v26 = vld [vmem:[#allocation5 + $0x80] ss:$12 sps:$4 sm:$0xff]   ;;  %2562 = vmatprep.mubr.msk.bf16.mxu1 %vm2968_vm0, %v2964_v21 }
  0x5f   : > { %2547 = vmatpush3.bf16.msra.mxu1 %v2756_v20  ;;  %v312_v25 = vsub.s32 0, %v3153_v23  ;;  %v3160_v27 = vld [vmem:[%s3558_s2] sm:$0x7]  ;;  %v316_v28 = vsub.s32 1, %v3153_v23  ;;  %v2759_v30 = vld [vmem:[#allocation5 + $0x68] ss:$12 sps:$4 sm:$0xff]  }
  0x60   : > { %2548 = vmatprep.subr.bf16.mxu1 %v2964_v21  ;;  %v2760_v35 = vld [vmem:[#allocation5 + $0x50] ss:$12 sps:$4 sm:$0xff]   ;;  %v2761_v39 = vld [vmem:[#allocation5 + $0x38] ss:$12 sps:$4 sm:$0xff]   ;;  %s2967_s13 = smov 32   ;;  %vm1421_vm1 = vcmask 261120  }
  0x61   : > { %458 = vmatpush1.bf16.msra.mxu0 %v2740_v6  ;;  %v313_v29 = vrot.slane %v3160_v27, %v312_v25  ;;  %v317_v31 = vrot.slane %v3160_v27, %v316_v28  ;;  %v2762_v42 = vld [vmem:[#allocation5 + $0x20] ss:$12 sps:$4 sm:$0xff]   ;;  %v2763_v43 = vld [vmem:[#allocation5 + $0x8] ss:$12 sps:$4 sm:$0xff]   ;;  %v2969_v44 = vmov 1983009808  }
  0x62   : > { %459 = vmatprep.subr.bf16.mxu0 %v2741_v7  ;;  %v560_v45 = vunpack.c.l.s4 %v2969_v44  ;;  %v2970_v47 = vmov 1934713408   ;;  %vm1637_vm3 = vcmask 130048   ;;  %vm2208_vm5 = vcmask 523264   ;;  %s271_s8 = scalar_lea.vmem [#allocation8], %s2444_s27  ;;  %s2511_s11 = sshll.u32 %s3025_s22, 8 }
  0x63   : > { %2549 = vmatpush3.bf16.msra.mxu1 %v2757_v24  ;;  %v592_v48 = vunpack.c.l.s4 %v2970_v47  ;;  %vm2211_vm6 = vcmask 785408   ;;  %s2343_s9 = sshll.u32 %s271_s8, 4  ;;  %s3513_s7 = scalar_lea.hbm %s3561_s5, %s2511_s11  ;;  %s3508_s9 = int_to_ptr.vmem [resolvable:$true] %s2343_s9 }
  0x64   : > { %2550 = vmatprep.subr.bf16.mxu1 %v2964_v21  ;;  %v561_v50 = vunpack.c.0.s8 %v560_v45  ;;  %s2330_s27 = scalar_lea.sflag [#allocation4], %s3131_s23  ;;  %s2884_s6 = scalar_lea.vmem %s3508_s9, 256 }
  0x65   : > { %460 = vmatpush1.bf16.msra.mxu0 %v2743_v8  ;;  %v593_v52 = vunpack.c.0.s8 %v592_v48  ;;  %p2885_p11 = scmp.ne.s32.totalorder %s3508_s9, %s2884_s6  ;;  %p3577_p10 = scmp.ne.s32.totalorder %s3571_s30, 0 }
  0x66   : > { %461 = vmatprep.subr.bf16.mxu0 %v2744_v9  ;;  %v3209_v54 = vsub.s32 %v561_v50, %v3153_v23  ;;  %s2971_s22 = smov [#allocation8]  }
  0x67   : > { %2551 = vmatpush3.bf16.msra.mxu1 %v2758_v26  ;;  %v3212_v60 = vsub.s32 %v593_v52, %v3153_v23  ;;  %p2886_p1 = pnand %p2885_p11, %p3577_p10  ;;  %s2888_s24 = sshll.u32 %s2971_s22, 4  ;;  %s2889_s24 = int_to_ptr.vmem [resolvable:$false] %s2888_s24 }
  0x68   : > { %2552 = vmatprep.subr.bf16.mxu1 %v2964_v21  ;;  %s2890_s26 = scalar_lea.vmem %s2889_s24, 512  ;;  %p2891_p6 = scmp.lt.s32.totalorder %s3508_s9, %s2889_s24 }
  0x69   : > { %462 = vmatpush1.bf16.msra.mxu0 %v2746_v10  ;;  %p2887_p2 = pneg %p2886_p1  ;;  %p2892_p12 = scmp.lt.s32.totalorder %s2890_s26, %s2884_s6 }
  0x6a   : > { %463 = vmatprep.subr.bf16.mxu0 %v2747_v11 }
  0x6b   : > { %2553 = vmatpush3.bf16.msra.mxu1 %v2759_v30  ;;  %p2893_p3 = por %p2892_p12, %p2891_p6 }
  0x6c   : > { %2554 = vmatprep.subr.bf16.mxu1 %v2964_v21 }
  0x6d   : > { %464 = vmatpush1.bf16.msra.mxu0 %v2749_v12  ;;  %p2894_p9 = pnand %p2893_p3, %p2887_p2 }
  0x6e   : > { %465 = vmatprep.subr.bf16.mxu0 %v2750_v13 }
  0x6f   : > { %2555 = vmatpush3.bf16.msra.mxu1 %v2760_v35 }
  0x70   : > { %2556 = vmatprep.subr.bf16.mxu1 %v2964_v21 }
  0x71   : > { %466 = vmatpush1.bf16.msra.mxu0 %v2752_v14 }
  0x72   : > { %467 = vmatprep.subr.bf16.mxu0 %v2753_v15 }
  0x73   : > { %2557 = vmatpush3.bf16.msra.mxu1 %v2761_v39 }
  0x74   : > { %2558 = vmatprep.subr.bf16.mxu1 %v2964_v21 }
  0x75   : > { %468 = vmatpush1.bf16.msra.mxu0 %v2755_v16 }
  0x76   : > { %2590 = vmatprep.subr.bf16.mxu0 %v2964_v21 }
  0x77   : > { %2559 = vmatpush3.bf16.msra.mxu1 %v2762_v42 }
  0x78   : > { %486 = vmatmul.mubr.bf16.vlgmr.msra.gmra.mxu0 %v275_v19  ;;  %2560 = vmatprep.subr.bf16.mxu1 %v2964_v21 }
  0x79   : > { %2592 = vmatprep.mubr.msk.bf16.mxu0 %vm2968_vm0, %v2964_v21 }
  0x7b   : > { %2561 = vmatpush3.bf16.msra.mxu1 %v2763_v43 }
  0x7c   : > { %2566 = vmatprep.subr.bf16.mxu1 %v2964_v21 }
  0x7e   : > { %2563 = vmatmul.mubr.bf16.vlgmr.msra.gmra.mxu1 %v275_v19 }
  0x7f   : > { %2568 = vmatprep.mubr.msk.bf16.mxu1 %vm2968_vm0, %v2964_v21 }
 0x138   : > { %v487_v32 = vpop.f32.mrf.mxu0 }
 0x139   : > { %v3166_v33 = vadd.f32 %v487_v32, %v313_v29 }
 0x13a   : > { %v489_v34 = vpop.f32.mrf.mxu0 }
 0x13b   : > { %v490_v36 = vadd.f32 %v489_v34, %v317_v31  ;;  %539 = vrot.lane.b32.xlu0 %v3166_v33, %s2965_s10 }
 0x13c   : > { %v491_v37 = vpop.f32.mrf.mxu0 }
 0x13d   : > { %837 = vrot.lane.b32.xlu1 %v490_v36, %s2966_s12  ;;  %v3173_v38 = vadd.f32 %v491_v37, %v313_v29 }
 0x13e   : > { %v493_v40 = vpop.f32.mrf.mxu0 }
 0x13f   : > { %831 = vrot.lane.b32.xlu0 %v490_v36, %s2965_s10  ;;  %v3179_v41 = vadd.f32 %v493_v40, %v317_v31 }
 0x141   : > { %541 = vrot.lane.b32.xlu1 %v3173_v38, %s2965_s10 }
 0x143   : > { %843 = vrot.lane.b32.xlu0 %v490_v36, %s2967_s13 }
 0x145   : > { %839 = vrot.lane.b32.xlu1 %v3179_v41, %s2966_s12 }
 0x147   : > { %833 = vrot.lane.b32.xlu0 %v3179_v41, %s2965_s10 }
 0x149   : > { %845 = vrot.lane.b32.xlu1 %v3179_v41, %s2967_s13 }
 0x14b   : > { %545 = vrot.lane.b32.xlu0 %v3166_v33, %s2966_s12 }
 0x14d   : > { %547 = vrot.lane.b32.xlu1 %v3173_v38, %s2966_s12 }
 0x14f   : > { %551 = vrot.lane.b32.xlu0 %v3166_v33, %s2967_s13 }
 0x151   : > { %553 = vrot.lane.b32.xlu1 %v3173_v38, %s2967_s13 }
 0x1ad   : > { %v3204_v46 = vpop.permute.xlu0 %539 }
 0x1af   : > { %v838_v49 = vpop.permute.xlu1 %837 }
 0x1b0   : > { %v849_v55 = vcombine.low %v490_v36, %v838_v49  ;;  %v850_v56 = vcombine.high %v490_v36, %v838_v49 }
 0x1b1   : > { %v832_v51 = vpop.permute.xlu0 %831 }
 0x1b2   : > { %v857_v62 = vrot.slane %v849_v55, %v3209_v54  ;;  %v864_v63 = vrot.slane %v850_v56, %v3209_v54 }
 0x1b3   : > { %v3206_v53 = vpop.permute.xlu1 %541 }
 0x1b5   : > { %v844_v57 = vpop.permute.xlu0 %843 }
 0x1b6   : > { %v865_v58 = vcombine.low %v832_v51, %v844_v57  ;;  %v866_v59 = vcombine.high %v832_v51, %v844_v57 }
 0x1b7   : > { %v840_v61 = vpop.permute.xlu1 %839 }
 0x1b8   : > { %v873_v0 = vrot.slane %v865_v58, %v3209_v54  ;;  %v880_v1 = vrot.slane %v866_v59, %v3209_v54  ;;  %v917_v7 = vcombine.low %v3179_v41, %v840_v61  ;;  %v918_v8 = vcombine.high %v3179_v41, %v840_v61 }
 0x1b9   : > { %v834_v2 = vpop.permute.xlu0 %833 }
 0x1ba   : > { %v881_v3 = vcombine.low %v857_v62, %v873_v0  ;;  %v882_v4 = vcombine.high %v857_v62, %v873_v0  ;;  %v897_v5 = vcombine.low %v864_v63, %v880_v1  ;;  %v898_v6 = vcombine.high %v864_v63, %v880_v1 }
 0x1bb   : > { %v846_v9 = vpop.permute.xlu1 %845  ;;  %v925_v19 = vrot.slane %v917_v7, %v3209_v54  ;;  %v932_v29 = vrot.slane %v918_v8, %v3209_v54 }
 0x1bc   : > { %v889_v10 = vrot.slane %v881_v3, %v3212_v60  ;;  %v896_v11 = vrot.slane %v882_v4, %v3212_v60  ;;  %v905_v12 = vrot.slane %v897_v5, %v3212_v60  ;;  %v912_v13 = vrot.slane %v898_v6, %v3212_v60 }
 0x1bd   : > { %v933_v14 = vcombine.low %v834_v2, %v846_v9  ;;  %v934_v15 = vcombine.high %v834_v2, %v846_v9  ;;  %v546_v16 = vpop.permute.xlu0 %545 }
 0x1be   : > { %v985_v17 = vcombine.low %v889_v10, %v896_v11  ;;  %v2476_v18 = vcombine.high %v889_v10, %v896_v11  ;;  %v1001_v26 = vcombine.low %v905_v12, %v912_v13  ;;  %v2477_v28 = vcombine.high %v905_v12, %v912_v13 }
 0x1bf   : > { %v941_v20 = vrot.slane %v933_v14, %v3209_v54  ;;  %v948_v24 = vrot.slane %v934_v15, %v3209_v54  ;;  %v548_v25 = vpop.permute.xlu1 %547  ;;  %v557_v32 = vcombine.low %v3166_v33, %v546_v16  ;;  %v558_v34 = vcombine.high %v3166_v33, %v546_v16 }
 0x1c0   : > { %v3231_v36 = vrot.slane %v985_v17, %v3209_v54  ;;  %v3234_v37 = vrot.slane %v2476_v18, %v3209_v54  ;;  %v3239_v44 = vrot.slane %v1001_v26, %v3209_v54  ;;  %v3242_v45 = vrot.slane %v2477_v28, %v3209_v54 }
 0x1c1   : > { %v949_v30 = vcombine.low %v925_v19, %v941_v20  ;;  %v950_v31 = vcombine.high %v925_v19, %v941_v20  ;;  %v552_v35 = vpop.permute.xlu0 %551  ;;  %v965_v41 = vcombine.low %v932_v29, %v948_v24  ;;  %v966_v42 = vcombine.high %v932_v29, %v948_v24 }
 0x1c2   : > { %v573_v33 = vcombine.low %v3204_v46, %v552_v35  ;;  %v574_v47 = vcombine.high %v3204_v46, %v552_v35  ;;  %v565_v48 = vrot.slane %v557_v32, %v3209_v54  ;;  %v572_v49 = vrot.slane %v558_v34, %v3209_v54 }
 0x1c3   : > { %v957_v39 = vrot.slane %v949_v30, %v3212_v60  ;;  %v964_v40 = vrot.slane %v950_v31, %v3212_v60  ;;  %v554_v43 = vpop.permute.xlu1 %553  ;;  %v625_v50 = vcombine.low %v3173_v38, %v548_v25  ;;  %v626_v51 = vcombine.high %v3173_v38, %v548_v25 }
 0x1c4   : > { %v581_v52 = vrot.slane %v573_v33, %v3209_v54  ;;  %v588_v55 = vrot.slane %v574_v47, %v3209_v54  ;;  %v641_v56 = vcombine.low %v3206_v53, %v554_v43  ;;  %v642_v57 = vcombine.high %v3206_v53, %v554_v43 }
 0x1c5   : > { %v973_v58 = vrot.slane %v965_v41, %v3212_v60  ;;  %v980_v46 = vrot.slane %v966_v42, %v3212_v60  ;;  %v1053_v59 = vcombine.low %v957_v39, %v964_v40  ;;  %v2478_v61 = vcombine.high %v957_v39, %v964_v40 }
 0x1c6   : > { %v589_v62 = vcombine.low %v565_v48, %v581_v52  ;;  %v590_v63 = vcombine.high %v565_v48, %v581_v52  ;;  %v605_v0 = vcombine.low %v572_v49, %v588_v55  ;;  %v606_v1 = vcombine.high %v572_v49, %v588_v55 }
 0x1c7   : > { %v633_v38 = vrot.slane %v625_v50, %v3209_v54  ;;  %v640_v2 = vrot.slane %v626_v51, %v3209_v54  ;;  %v649_v3 = vrot.slane %v641_v56, %v3209_v54  ;;  %v656_v4 = vrot.slane %v642_v57, %v3209_v54 }
 0x1c8   : > { %v597_v53 = vrot.slane %v589_v62, %v3212_v60  ;;  %v604_v5 = vrot.slane %v590_v63, %v3212_v60  ;;  %v613_v6 = vrot.slane %v605_v0, %v3212_v60  ;;  %v620_v7 = vrot.slane %v606_v1, %v3212_v60 }
 0x1c9   : > { %v657_v8 = vcombine.low %v633_v38, %v649_v3  ;;  %v658_v9 = vcombine.high %v633_v38, %v649_v3  ;;  %v673_v10 = vcombine.low %v640_v2, %v656_v4  ;;  %v674_v11 = vcombine.high %v640_v2, %v656_v4 }
 0x1ca   : > { %v1060_v12 = vrot.slane %v1053_v59, %v3209_v54  ;;  %v1068_v13 = vrot.slane %v2478_v61, %v3209_v54  ;;  %v1069_v14 = vcombine.low %v973_v58, %v980_v46  ;;  %v2479_v15 = vcombine.high %v973_v58, %v980_v46 }
 0x1cb   : > { %v665_v16 = vrot.slane %v657_v8, %v3212_v60  ;;  %v672_v17 = vrot.slane %v658_v9, %v3212_v60  ;;  %v681_v18 = vrot.slane %v673_v10, %v3212_v60  ;;  %v688_v19 = vrot.slane %v674_v11, %v3212_v60 }
 0x1cc   : > { %v693_v20 = vcombine.low %v597_v53, %v604_v5  ;;  %v2472_v24 = vcombine.high %v597_v53, %v604_v5  ;;  %v709_v25 = vcombine.low %v613_v6, %v620_v7  ;;  %v2473_v26 = vcombine.high %v613_v6, %v620_v7 }
 0x1cd   : > { %v761_v28 = vcombine.low %v665_v16, %v672_v17  ;;  %v2474_v29 = vcombine.high %v665_v16, %v672_v17  ;;  %v777_v30 = vcombine.low %v681_v18, %v688_v19  ;;  %v2475_v31 = vcombine.high %v681_v18, %v688_v19 }
 0x1ce   : > { %v1076_v32 = vrot.slane %v1069_v14, %v3209_v54  ;;  %v1084_v34 = vrot.slane %v2479_v15, %v3209_v54  ;;  %v1017_v35 = vcombine.low %v3231_v36, %v3234_v37  ;;  %v1033_v39 = vcombine.low %v3239_v44, %v3242_v45 }
 0x1cf   : > { %v768_v40 = vrot.slane %v761_v28, %v3209_v54  ;;  %v776_v41 = vrot.slane %v2474_v29, %v3209_v54  ;;  %v784_v42 = vrot.slane %v777_v30, %v3209_v54  ;;  %v792_v43 = vrot.slane %v2475_v31, %v3209_v54 }
 0x1d0   : > { %v700_v33 = vrot.slane %v693_v20, %v3209_v54  ;;  %v708_v47 = vrot.slane %v2472_v24, %v3209_v54  ;;  %v716_v48 = vrot.slane %v709_v25, %v3209_v54  ;;  %v724_v49 = vrot.slane %v2473_v26, %v3209_v54 }
 0x1d1   : > { %v793_v50 = vcombine.low %v768_v40, %v776_v41  ;;  %v809_v51 = vcombine.low %v784_v42, %v792_v43  ;;  %v1025_v52 = vrot.slane %v1017_v35, %v3212_v60  ;;  %v1041_v55 = vrot.slane %v1033_v39, %v3212_v60 }
 0x1d2   : > { %v1085_v56 = vcombine.low %v1060_v12, %v1068_v13  ;;  %v1101_v57 = vcombine.low %v1076_v32, %v1084_v34  ;;  %v725_v58 = vcombine.low %v700_v33, %v708_v47  ;;  %v741_v46 = vcombine.low %v716_v48, %v724_v49 }
 0x1d3   : > { %v801_v62 = vrot.slane %v793_v50, %v3212_v60  ;;  %v817_v63 = vrot.slane %v809_v51, %v3212_v60  ;;  %v1049_v0 = vcombine.low %v1025_v52, %v1041_v55  ;;  %v1086_v6 = vcombine.high %v1060_v12, %v1068_v13  ;;  %v530_v50 = vpop.f32.mrf.mxu1 }
 0x1d4   : > { %v1093_v59 = vrot.slane %v1085_v56, %v3212_v60  ;;  %v1109_v61 = vrot.slane %v1101_v57, %v3212_v60  ;;  %v733_v38 = vrot.slane %v725_v58, %v3212_v60  ;;  %v749_v2 = vrot.slane %v741_v46, %v3212_v60 }
 0x1d5   : > { %v825_v4 = vcombine.low %v801_v62, %v817_v63  ;;  %v1102_v7 = vcombine.high %v1076_v32, %v1084_v34  ;;  %v1050_v9 = vcombine.high %v1025_v52, %v1041_v55  ;;  %v1018_v10 = vcombine.high %v3231_v36, %v3234_v37  ;;  %v2564_v51 = vpop.f32.mrf.mxu1 }
 0x1d6   : > { %v1117_v1 = vcombine.low %v1093_v59, %v1109_v61  ;;  %v1118_v5 = vcombine.high %v1093_v59, %v1109_v61  ;;  %v757_v8 = vcombine.low %v733_v38, %v749_v2  ;;  %v1034_v11 = vcombine.high %v3239_v44, %v3242_v45 }
 0x1d7   : > { %v1100_v16 = vrot.slane %v1086_v6, %v3212_v60  ;;  %v1116_v17 = vrot.slane %v1102_v7, %v3212_v60  ;;  %v1032_v12 = vrot.slane %v1018_v10, %v3212_v60  ;;  %v794_v36 = vcombine.high %v768_v40, %v776_v41  ;;  %v533_v52 = vpop.f32.mrf.mxu1 }
 0x1d8   : > { %v1417_v3 = vpack.c.bf16 %v1117_v1, %v1049_v0  ;;  %v1413_v14 = vpack.c.bf16 %v825_v4, %v757_v8  ;;  %v1418_v15 = vpack.c.bf16 %v1118_v5, %v1050_v9  ;;  %v1048_v13 = vrot.slane %v1034_v11, %v3212_v60 }
 0x1d9   : > { %v1119_v19 = vcombine.low %v1100_v16, %v1116_v17  ;;  %v810_v37 = vcombine.high %v784_v42, %v792_v43  ;;  %v826_v44 = vcombine.high %v801_v62, %v817_v63  ;;  %v726_v20 = vcombine.high %v700_v33, %v708_v47  ;;  %v2565_v55 = vpop.f32.mrf.mxu1 }
 0x1da   : > { %v1426_v53 = vsel %vm1421_vm1, %v1417_v3, 0  ;;  %v1473_v18 = vsel %vm1421_vm1, %v1418_v15, 0  ;;  %v1051_v45 = vcombine.low %v1032_v12, %v1048_v13  ;;  %v742_v24 = vcombine.high %v716_v48, %v724_v49 }
 0x1db   : > { %2567 = vmatpush3.bf16.xpose.msra.mxu1 %v1426_v53  ;;  %v758_v25 = vcombine.high %v733_v38, %v749_v2  ;;  %v808_v28 = vrot.slane %v794_v36, %v3212_v60  ;;  %v824_v29 = vrot.slane %v810_v37, %v3212_v60  ;;  %v740_v31 = vrot.slane %v726_v20, %v3212_v60 }
 0x1dc   : > { %2572 = vmatprep.subr.bf16.mxu1 %v2964_v21  ;;  %v1419_v26 = vpack.c.bf16 %v1119_v19, %v1051_v45  ;;  %v756_v32 = vrot.slane %v742_v24, %v3212_v60  ;;  %v1120_v35 = vcombine.high %v1100_v16, %v1116_v17  ;;  %v1052_v40 = vcombine.high %v1032_v12, %v1048_v13 }
 0x1dd   : > { %v1414_v30 = vpack.c.bf16 %v826_v44, %v758_v25  ;;  %v827_v39 = vcombine.low %v808_v28, %v824_v29  ;;  %v828_v47 = vcombine.high %v808_v28, %v824_v29  ;;  %v1622_v56 = vand.u32 127, %v310_v22 }
 0x1de   : > { %v1520_v34 = vsel %vm1421_vm1, %v1419_v26, 0  ;;  %v759_v41 = vcombine.low %v740_v31, %v756_v32  ;;  %v1420_v42 = vpack.c.bf16 %v1120_v35, %v1052_v40  ;;  %v760_v48 = vcombine.high %v740_v31, %v756_v32 }
 0x1df   : > { %vm1623_vm2 = vcmp.ge.s32.totalorder %v3153_v23, %v1622_v56  ;;  %v1620_v58 = vadd.s32 8, %v3153_v23  ;;  %v320_v31 = vsub.s32 2, %v3153_v23 }
 0x1e0   : > { %v1415_v43 = vpack.c.bf16 %v827_v39, %v759_v41  ;;  %v1567_v33 = vsel %vm1421_vm1, %v1420_v42, 0  ;;  %v1416_v49 = vpack.c.bf16 %v828_v47, %v760_v48 }
 0x1e1   : > { %vm1624_vm4 = vcmp.ge.s32.totalorder %v1620_v58, %v1622_v56  ;;  %v321_v32 = vrot.slane %v3160_v27, %v320_v31 }
 0x1e2   : > { %2569 = vmatmul.mubr.msk.bf16.vlgmr.msra.gmra.mxu1 %vm1421_vm1, %v1413_v14 }
 0x1e3   : > { %2573 = vmatpush3.bf16.xpose.msra.mxu1 %v1473_v18  ;;  %2574 = vmatprep.mubr.msk.bf16.mxu1 %vm2968_vm0, %v2964_v21  ;;  %v3358_v35 = vadd.f32 %v533_v52, %v321_v32 }
 0x1e4   : > { %2578 = vmatprep.subr.bf16.mxu1 %v2964_v21 }
 0x1ea   : > { %2575 = vmatmul.mubr.msk.bf16.vlgmr.msra.gmra.mxu1 %vm1421_vm1, %v1414_v30 }
 0x1eb   : > { %2579 = vmatpush3.bf16.xpose.msra.mxu1 %v1520_v34  ;;  %2580 = vmatprep.mubr.msk.bf16.mxu1 %vm2968_vm0, %v2964_v21  ;;  %v3352_v34 = vadd.f32 %v530_v50, %v321_v32 }
 0x1ec   : > { %2584 = vmatprep.subr.bf16.mxu1 %v2964_v21 }
 0x1f2   : > { %2581 = vmatmul.mubr.msk.bf16.vlgmr.msra.gmra.mxu1 %vm1421_vm1, %v1415_v43 }
 0x1f3   : > { %2585 = vmatpush3.bf16.xpose.msra.mxu1 %v1567_v33  ;;  %2586 = vmatprep.mubr.msk.bf16.mxu1 %vm2968_vm0, %v2964_v21 }
 0x1f4   : > { %2596 = vmatprep.subr.bf16.mxu1 %v2964_v21 }
 0x1fa   : > { %2587 = vmatmul.mubr.msk.bf16.vlgmr.msra.gmra.mxu1 %vm1421_vm1, %v1416_v49 }
 0x1fb   : > { %2598 = vmatprep.mubr.msk.bf16.mxu1 %vm2968_vm0, %v2964_v21 }
 0x2a2   : > { %v1462_v57 = vpop.f32.mrf.mxu1 }
 0x2a3   : > { %v1610_v46 = vmul.f32 0.17677669, %v1462_v57 }
 0x2a4   : > { %v2570_v59 = vpop.f32.mrf.mxu1 }
 0x2a5   : > { %v1629_v61 = vsel %vm1623_vm2, %v1610_v46, -1e+30 }
 0x2a6   : > { %v1465_v62 = vpop.f32.mrf.mxu1  ;;  %v1638_v63 = vsel %vm1637_vm3, %v1629_v61, -inf }
 0x2a7   : > { %v1611_v0 = vmul.f32 0.17677669, %v1465_v62  ;;  %1639 = vmax.xlane.f32.xlu0 %v1638_v63 }
 0x2a8   : > { %v2571_v1 = vpop.f32.mrf.mxu1 }
 0x2a9   : > { %v1630_v22 = vsel %vm1624_vm4, %v1611_v0, -1e+30 }
 0x2aa   : > { %v1509_v38 = vpop.f32.mrf.mxu1  ;;  %v1641_v2 = vsel %vm1637_vm3, %v1630_v22, -inf }
 0x2ab   : > { %v1612_v3 = vmul.f32 0.17677669, %v1509_v38  ;;  %1642 = vmax.xlane.f32.xlu1 %v1641_v2 }
 0x2ac   : > { %v2576_v4 = vpop.f32.mrf.mxu1 }
 0x2ad   : > { %v1631_v53 = vsel %vm1623_vm2, %v1612_v3, -1e+30 }
 0x2ae   : > { %v1512_v5 = vpop.f32.mrf.mxu1  ;;  %v1644_v6 = vsel %vm1637_vm3, %v1631_v53, -inf }
 0x2af   : > { %v1613_v7 = vmul.f32 0.17677669, %v1512_v5  ;;  %1645 = vmax.xlane.f32.xlu0 %v1644_v6 }
 0x2b0   : > { %v2577_v8 = vpop.f32.mrf.mxu1 }
 0x2b1   : > { %v1632_v9 = vsel %vm1624_vm4, %v1613_v7, -1e+30 }
 0x2b2   : > { %v1556_v10 = vpop.f32.mrf.mxu1  ;;  %v1647_v11 = vsel %vm1637_vm3, %v1632_v9, -inf }
 0x2b3   : > { %v1614_v14 = vmul.f32 0.17677669, %v1556_v10  ;;  %1648 = vmax.xlane.f32.xlu0 %v1647_v11 }
 0x2b4   : > { %v2582_v15 = vpop.f32.mrf.mxu1 }
 0x2b5   : > { %v1633_v16 = vsel %vm1623_vm2, %v1614_v14, -1e+30 }
 0x2b6   : > { %v1559_v17 = vpop.f32.mrf.mxu1  ;;  %v1650_v12 = vsel %vm1637_vm3, %v1633_v16, -inf }
 0x2b7   : > { %v1615_v13 = vmul.f32 0.17677669, %v1559_v17  ;;  %1651 = vmax.xlane.f32.xlu1 %v1650_v12 }
 0x2b8   : > { %v2583_v18 = vpop.f32.mrf.mxu1 }
 0x2b9   : > { %v3341_v19 = vsel %vm1624_vm4, %v1615_v13, -1e+30 }
 0x2ba   : > { %v1603_v36 = vpop.f32.mrf.mxu1  ;;  %v1653_v37 = vsel %vm1637_vm3, %v3341_v19, -inf }
 0x2bb   : > { %v1616_v44 = vmul.f32 0.17677669, %v1603_v36  ;;  %1654 = vmax.xlane.f32.xlu0 %v1653_v37 }
 0x2bc   : > { %v2588_v45 = vpop.f32.mrf.mxu1 }
 0x2bd   : > { %v1635_v20 = vsel %vm1623_vm2, %v1616_v44, -1e+30 }
 0x2be   : > { %v1606_v24 = vpop.f32.mrf.mxu1  ;;  %v1656_v25 = vsel %vm1637_vm3, %v1635_v20, -inf }
 0x2bf   : > { %v1617_v26 = vmul.f32 0.17677669, %v1606_v24  ;;  %1657 = vmax.xlane.f32.xlu1 %v1656_v25 }
 0x2c0   : > { %v2589_v28 = vpop.f32.mrf.mxu1 }
 0x2c1   : > { %v1636_v29 = vsel %vm1624_vm4, %v1617_v26, -1e+30 }
 0x2c2   : > { %v1659_v30 = vsel %vm1637_vm3, %v1636_v29, -inf }
 0x2c3   : > { %1660 = vmax.xlane.f32.xlu0 %v1659_v30 }
 0x2d0   : > { %1123 = vrot.lane.b32.xlu1 %v3352_v34, %s2965_s10 }
 0x2d4   : > { %1129 = vrot.lane.b32.xlu1 %v3352_v34, %s2966_s12 }
 0x2d8   : > { %1131 = vrot.lane.b32.xlu1 %v3358_v35, %s2966_s12 }
 0x2d9   : > { %1125 = vrot.lane.b32.xlu0 %v3358_v35, %s2965_s10 }
 0x2dd   : > { %1135 = vrot.lane.b32.xlu0 %v3352_v34, %s2967_s13 }
 0x330   : > { %v1640_v23 = vpop.xlane.xlu0 %1639 }
 0x331   : > { %v1662_v27 = vsub.f32 %v1629_v61, %v1640_v23 }
 0x333   : > { %v1670_v39 = vmul.f32 1.442695, %v1662_v27 }
 0x334   : > { %v1643_v40 = vpop.xlane.xlu1 %1642 }
 0x335   : > { %2772 = vpow2.f32 %v1670_v39  ;;  %v1663_v41 = vsub.f32 %v1630_v22, %v1643_v40 }
 0x337   : > { %v1672_v42 = vmul.f32 1.442695, %v1663_v41 }
 0x338   : > { %v1646_v43 = vpop.xlane.xlu0 %1645 }
 0x339   : > { %2774 = vpow2.f32 %v1672_v42  ;;  %v1664_v33 = vsub.f32 %v1631_v53, %v1646_v43 }
 0x33b   : > { %v1674_v47 = vmul.f32 1.442695, %v1664_v33 }
 0x33c   : > { %v1649_v48 = vpop.xlane.xlu0 %1648 }
 0x33d   : > { %2776 = vpow2.f32 %v1674_v47  ;;  %v1665_v49 = vsub.f32 %v1632_v9, %v1649_v48 }
 0x33f   : > { %v1676_v50 = vmul.f32 1.442695, %v1665_v49 }
 0x340   : > { %v1652_v51 = vpop.xlane.xlu1 %1651 }
 0x341   : > { %2778 = vpow2.f32 %v1676_v50  ;;  %v1666_v52 = vsub.f32 %v1633_v16, %v1652_v51 }
 0x342   : > { %v3366_v55 = vpop.eup %2772 }
 0x343   : > { %v1678_v56 = vmul.f32 1.442695, %v1666_v52  ;;  %v1686_v57 = vsel %vm1637_vm3, %v3366_v55, 0.0 }
 0x344   : > { %1687 = vadd.xlane.f32.xlu1 %v1686_v57  ;;  %v1655_v59 = vpop.xlane.xlu0 %1654 }
 0x345   : > { %2780 = vpow2.f32 %v1678_v56  ;;  %v1667_v10 = vsub.f32 %v3341_v19, %v1655_v59 }
 0x346   : > { %v3370_v58 = vpop.eup %2774 }
 0x347   : > { %v1689_v46 = vsel %vm1637_vm3, %v3370_v58, 0.0  ;;  %v1680_v11 = vmul.f32 1.442695, %v1667_v10 }
 0x348   : > { %v1658_v61 = vpop.xlane.xlu1 %1657  ;;  %1690 = vadd.xlane.f32.xlu0 %v1689_v46 }
 0x349   : > { %v1668_v62 = vsub.f32 %v1635_v20, %v1658_v61 }
 0x34a   : > { %v3374_v63 = vpop.eup %2776 }
 0x34b   : > { %v1682_v0 = vmul.f32 1.442695, %v1668_v62  ;;  %v1692_v1 = vsel %vm1637_vm3, %v3374_v63, 0.0 }
 0x34c   : > { %1693 = vadd.xlane.f32.xlu1 %v1692_v1  ;;  %v1661_v22 = vpop.xlane.xlu0 %1660  ;;  %v1124_v17 = vpop.permute.xlu1 %1123 }
 0x34d   : > { %2782 = vpow2.f32 %v1682_v0  ;;  %v1669_v38 = vsub.f32 %v1636_v29, %v1661_v22 }
 0x34e   : > { %v3378_v2 = vpop.eup %2778 }
 0x34f   : > { %v1684_v3 = vmul.f32 1.442695, %v1669_v38  ;;  %v1695_v4 = vsel %vm1637_vm3, %v3378_v2, 0.0 }
 0x350   : > { %1696 = vadd.xlane.f32.xlu0 %v1695_v4  ;;  %v1126_v16 = vpop.permute.xlu0 %1125  ;;  %v1130_v13 = vpop.permute.xlu1 %1129 }
 0x351   : > { %2784 = vpow2.f32 %v1684_v3  ;;  %v1141_v37 = vcombine.low %v3352_v34, %v1130_v13  ;;  %v1142_v44 = vcombine.high %v3352_v34, %v1130_v13 }
 0x352   : > { %v3382_v53 = vpop.eup %2780  ;;  %2786 = vpow2.f32 %v1680_v11 }
 0x353   : > { %v1698_v5 = vsel %vm1637_vm3, %v3382_v53, 0.0  ;;  %v1149_v24 = vrot.slane %v1141_v37, %v3209_v54  ;;  %v1156_v25 = vrot.slane %v1142_v44, %v3209_v54 }
 0x354   : > { %1699 = vadd.xlane.f32.xlu0 %v1698_v5  ;;  %v1136_v12 = vpop.permute.xlu0 %1135  ;;  %v1132_v45 = vpop.permute.xlu1 %1131 }
 0x355   : > { %v1157_v18 = vcombine.low %v1124_v17, %v1136_v12  ;;  %v1158_v36 = vcombine.high %v1124_v17, %v1136_v12  ;;  %v1209_v41 = vcombine.low %v3358_v35, %v1132_v45  ;;  %v1210_v42 = vcombine.high %v3358_v35, %v1132_v45 }
 0x357   : > { %v1165_v19 = vrot.slane %v1157_v18, %v3209_v54  ;;  %v1172_v20 = vrot.slane %v1158_v36, %v3209_v54  ;;  %v1217_v56 = vrot.slane %v1209_v41, %v3209_v54  ;;  %v1224_v57 = vrot.slane %v1210_v42, %v3209_v54 }
 0x359   : > { %v1173_v26 = vcombine.low %v1149_v24, %v1165_v19  ;;  %v1174_v28 = vcombine.high %v1149_v24, %v1165_v19  ;;  %v1189_v29 = vcombine.low %v1156_v25, %v1172_v20  ;;  %v1190_v30 = vcombine.high %v1156_v25, %v1172_v20 }
 0x35a   : > { %v3386_v6 = vpop.eup %2782 }
 0x35b   : > { %v1704_v7 = vsel %vm1637_vm3, %v3386_v6, 0.0  ;;  %v1181_v32 = vrot.slane %v1173_v26, %v3212_v60  ;;  %v1188_v23 = vrot.slane %v1174_v28, %v3212_v60  ;;  %v1197_v34 = vrot.slane %v1189_v29, %v3212_v60 }
 0x35c   : > { %1705 = vadd.xlane.f32.xlu0 %v1704_v7  ;;  %v1204_v27 = vrot.slane %v1190_v30, %v3212_v60 }
 0x35d   : > { %1137 = vrot.lane.b32.xlu1 %v3358_v35, %s2967_s13  ;;  %v1277_v43 = vcombine.low %v1181_v32, %v1188_v23  ;;  %v2480_v33 = vcombine.high %v1181_v32, %v1188_v23 }
 0x35e   : > { %v3390_v8 = vpop.eup %2784  ;;  %v1293_v47 = vcombine.low %v1197_v34, %v1204_v27  ;;  %v2481_v48 = vcombine.high %v1197_v34, %v1204_v27 }
 0x35f   : > { %v1707_v9 = vsel %vm1637_vm3, %v3390_v8, 0.0  ;;  %v3397_v14 = vpop.eup %2786  ;;  %v1284_v46 = vrot.slane %v1277_v43, %v3209_v54  ;;  %v1292_v61 = vrot.slane %v2480_v33, %v3209_v54 }
 0x360   : > { %1708 = vadd.xlane.f32.xlu0 %v1707_v9  ;;  %v1701_v15 = vsel %vm1637_vm3, %v3397_v14, 0.0  ;;  %v1300_v62 = vrot.slane %v1293_v47, %v3209_v54  ;;  %v1308_v0 = vrot.slane %v2481_v48, %v3209_v54 }
 0x361   : > { %v1309_v10 = vcombine.low %v1284_v46, %v1292_v61  ;;  %v1310_v20 = vcombine.high %v1284_v46, %v1292_v61 }
 0x362   : > { %v1325_v11 = vcombine.low %v1300_v62, %v1308_v0  ;;  %v1326_v24 = vcombine.high %v1300_v62, %v1308_v0 }
 0x363   : > { %v1317_v19 = vrot.slane %v1309_v10, %v3212_v60 }
 0x364   : > { %v1333_v45 = vrot.slane %v1325_v11, %v3212_v60  ;;  %v1340_v41 = vrot.slane %v1326_v24, %v3212_v60 }
 0x366   : > { %v1341_v47 = vcombine.low %v1317_v19, %v1333_v45 }
 0x381   : > { %1702 = vadd.xlane.f32.xlu1 %v1701_v15 }
 0x3cd   : > { %v1688_v31 = vpop.xlane.xlu1 %1687 }
 0x3d1   : > { %v1691_v39 = vpop.xlane.xlu0 %1690 }
 0x3d2   : > { %2788 = vrcp.f32 %v1691_v39 }
 0x3d5   : > { %v1694_v40 = vpop.xlane.xlu1 %1693 }
 0x3d9   : > { %v1138_v49 = vpop.permute.xlu1 %1137  ;;  %v1697_v50 = vpop.xlane.xlu0 %1696 }
 0x3da   : > { %v1225_v51 = vcombine.low %v1126_v16, %v1138_v49  ;;  %v1226_v52 = vcombine.high %v1126_v16, %v1138_v49  ;;  %2790 = vrcp.f32 %v1697_v50  ;;  %v1342_v49 = vcombine.high %v1317_v19, %v1333_v45 }
 0x3db   : > { %2792 = vrcp.f32 %v1688_v31 }
 0x3dc   : > { %v1233_v59 = vrot.slane %v1225_v51, %v3209_v54  ;;  %v1240_v35 = vrot.slane %v1226_v52, %v3209_v54  ;;  %2794 = vrcp.f32 %v1694_v40  ;;  %v1324_v40 = vrot.slane %v1310_v20, %v3212_v60 }
 0x3dd   : > { %v1700_v13 = vpop.xlane.xlu0 %1699 }
 0x3de   : > { %v1241_v1 = vcombine.low %v1217_v56, %v1233_v59  ;;  %v1242_v22 = vcombine.high %v1217_v56, %v1233_v59  ;;  %v1257_v38 = vcombine.low %v1224_v57, %v1240_v35  ;;  %v1258_v3 = vcombine.high %v1224_v57, %v1240_v35 }
 0x3df   : > { %v2789_v31 = vpop.eup %2788  ;;  %v1343_v62 = vcombine.low %v1324_v40, %v1340_v41  ;;  %v1344_v0 = vcombine.high %v1324_v40, %v1340_v41 }
 0x3e0   : > { %v1249_v4 = vrot.slane %v1241_v1, %v3212_v60  ;;  %v1256_v5 = vrot.slane %v1242_v22, %v3212_v60  ;;  %v1265_v7 = vrot.slane %v1257_v38, %v3212_v60  ;;  %v1272_v9 = vrot.slane %v1258_v3, %v3212_v60 }
 0x3e1   : > { %v1719_v51 = vmul.f32 %v2789_v31, %v3370_v58 }
 0x3e2   : > { %v1345_v15 = vcombine.low %v1249_v4, %v1256_v5  ;;  %v2482_v16 = vcombine.high %v1249_v4, %v1256_v5  ;;  %v1361_v17 = vcombine.low %v1265_v7, %v1272_v9  ;;  %v2483_v12 = vcombine.high %v1265_v7, %v1272_v9 }
 0x3e4   : > { %v1352_v18 = vrot.slane %v1345_v15, %v3209_v54  ;;  %v1360_v36 = vrot.slane %v2482_v16, %v3209_v54  ;;  %v1368_v37 = vrot.slane %v1361_v17, %v3209_v54  ;;  %v1376_v44 = vrot.slane %v2483_v12, %v3209_v54  ;;  %v2766_v16 = vld [vmem:[#allocation7 + $0x28] sm:$0xff]   ;;  %v2767_v17 = vld [vmem:[#allocation7 + $0x20] sm:$0xff]  }
 0x3e5   : > { %v1706_v25 = vpop.xlane.xlu0 %1705 }
 0x3e6   : > { %v1377_v26 = vcombine.low %v1352_v18, %v1360_v36  ;;  %v1393_v28 = vcombine.low %v1368_v37, %v1376_v44  ;;  %v1378_v29 = vcombine.high %v1352_v18, %v1360_v36  ;;  %v1394_v30 = vcombine.high %v1368_v37, %v1376_v44 }
 0x3e7   : > { %v2791_v32 = vpop.eup %2790  ;;  %2796 = vrcp.f32 %v1706_v25 }
 0x3e8   : > { %v1385_v23 = vrot.slane %v1377_v26, %v3212_v60  ;;  %v1401_v34 = vrot.slane %v1393_v28, %v3212_v60  ;;  %v1392_v27 = vrot.slane %v1378_v29, %v3212_v60  ;;  %v2793_v39 = vpop.eup %2792  ;;  %v1408_v42 = vrot.slane %v1394_v30, %v3212_v60 }
 0x3e9   : > { %v2795_v43 = vpop.eup %2794  ;;  %v1709_v33 = vpop.xlane.xlu0 %1708  ;;  %v1721_v52 = vmul.f32 %v2791_v32, %v3378_v2  ;;  %v1718_v35 = vmul.f32 %v2793_v39, %v3366_v55 }
 0x3ea   : > { %v1409_v48 = vcombine.low %v1385_v23, %v1401_v34  ;;  %v1410_v50 = vcombine.high %v1385_v23, %v1401_v34  ;;  %2798 = vrcp.f32 %v1709_v33  ;;  %v1411_v46 = vcombine.low %v1392_v27, %v1408_v42 }
 0x3eb   : > { %v1412_v59 = vcombine.high %v1392_v27, %v1408_v42  ;;  %v1720_v61 = vmul.f32 %v2795_v43, %v3374_v63  ;;  %v1726_v1 = vpack.c.bf16 %v1719_v51, %v1718_v35  ;;  %2800 = vrcp.f32 %v1700_v13 }
 0x3ec   : > { %v1730_v56 = vpack.c.bf16 %v1409_v48, %v1341_v47  ;;  %v1731_v57 = vpack.c.bf16 %v1410_v50, %v1342_v49  ;;  %v1732_v58 = vpack.c.bf16 %v1411_v46, %v1343_v62 }
 0x3ed   : > { %v1727_v22 = vpack.c.bf16 %v1721_v52, %v1720_v61  ;;  %v1733_v2 = vpack.c.bf16 %v1412_v59, %v1344_v0 }
 0x3ee   : > { %2591 = vmatpush3.bf16.msra.mxu0 %v1730_v56  ;;  %2597 = vmatpush3.bf16.msra.mxu1 %v1731_v57 }
 0x3ef   : > { %2602 = vmatprep.subr.bf16.mxu0 %v2964_v21  ;;  %2608 = vmatprep.subr.bf16.mxu1 %v2964_v21 }
 0x3f1   : > { %2593 = vmatmul.mubr.msk.bf16.vlgmr.msra.gmra.mxu0 %vm1637_vm3, %v1726_v1  ;;  %2599 = vmatmul.mubr.msk.bf16.vlgmr.msra.gmra.mxu1 %vm1637_vm3, %v1727_v22 }
 0x3f2   : > { %2603 = vmatpush3.bf16.msra.mxu0 %v1732_v58  ;;  %2609 = vmatpush3.bf16.msra.mxu1 %v1733_v2 }
 0x3f3   : > { %2610 = vmatprep.mubr.msk.bf16.mxu1 %vm2968_vm0, %v2964_v21  ;;  %2604 = vmatprep.mubr.msk.bf16.mxu0 %vm2968_vm0, %v2964_v21 }
 0x3f4   : > { %2614 = vmatprep.subr.bf16.mxu0 %v2964_v21  ;;  %v2797_v55 = vpop.eup %2796 }
 0x3f5   : > { %v1724_v38 = vmul.f32 %v2797_v55, %v3386_v6  ;;  %v2764_v6 = vld [vmem:[#allocation7 + $0x38] sm:$0xff]  }
 0x3f7   : > { %v2799_v63 = vpop.eup %2798 }
 0x3f8   : > { %v1725_v3 = vmul.f32 %v2799_v63, %v3390_v8  ;;  %v2801_v7 = vpop.eup %2800  ;;  %v2765_v8 = vld [vmem:[#allocation7 + $0x30] sm:$0xff]  }
 0x3f9   : > { %v1722_v10 = vmul.f32 %v2801_v7, %v3382_v53  ;;  %v2768_v53 = vld [vmem:[#allocation7 + $0x18] sm:$0xff]  }
 0x3fa   : > { %v1729_v4 = vpack.c.bf16 %v1725_v3, %v1724_v38 }
 0x3fc   : > { %2611 = vmatmul.mubr.msk.bf16.vlgmr.msra.gmra.mxu1 %vm1637_vm3, %v1729_v4 }
 0x40a   : > { %v1703_v5 = vpop.xlane.xlu1 %1702 }
 0x40b   : > { %2802 = vrcp.f32 %v1703_v5 }
 0x418   : > { %v2803_v9 = vpop.eup %2802 }
 0x419   : > { %v1723_v11 = vmul.f32 %v2803_v9, %v3397_v14  ;;  %v2769_v14 = vld [vmem:[#allocation7 + $0x10] sm:$0xff]  }
 0x41b   : > { %v1728_v15 = vpack.c.bf16 %v1723_v11, %v1722_v10 }
 0x41d   : > { %2605 = vmatmul.mubr.msk.bf16.vlgmr.msra.gmra.mxu0 %vm1637_vm3, %v1728_v15 }
 0x41e   : > { %2630 = vmatprep.mubr.msk.bf16.mxu0 %vm2968_vm0, %v2964_v21  ;;  %2615 = vmatpush3.bf16.msra.mxu0 %v2764_v6 }
 0x41f   : > { %2616 = vmatprep.subr.bf16.mxu0 %v2964_v21 }
 0x422   : > { %2617 = vmatpush3.bf16.msra.mxu0 %v2765_v8 }
 0x423   : > { %2618 = vmatprep.subr.bf16.mxu0 %v2964_v21 }
 0x426   : > { %2619 = vmatpush3.bf16.msra.mxu0 %v2766_v16 }
 0x427   : > { %2620 = vmatprep.subr.bf16.mxu0 %v2964_v21 }
 0x42a   : > { %2621 = vmatpush3.bf16.msra.mxu0 %v2767_v17 }
 0x42b   : > { %2622 = vmatprep.subr.bf16.mxu0 %v2964_v21 }
 0x42e   : > { %2623 = vmatpush3.bf16.msra.mxu0 %v2768_v53 }
 0x42f   : > { %2624 = vmatprep.subr.bf16.mxu0 %v2964_v21 }
 0x432   : > { %2625 = vmatpush3.bf16.msra.mxu0 %v2769_v14 }
 0x433   : > { %2626 = vmatprep.subr.bf16.mxu0 %v2964_v21 }
 0x4b1   : > { %v1771_v12 = vpop.f32.mrf.mxu0  ;;  %v1815_v13 = vpop.f32.mrf.mxu1 }
 0x4b3   : > { %v2594_v18 = vpop.f32.mrf.mxu0  ;;  %v2600_v36 = vpop.f32.mrf.mxu1 }
 0x4b5   : > { %v1774_v37 = vpop.f32.mrf.mxu0  ;;  %v1818_v44 = vpop.f32.mrf.mxu1 }
 0x4b7   : > { %v2595_v19 = vpop.f32.mrf.mxu0  ;;  %v2601_v45 = vpop.f32.mrf.mxu1 }
 0x4bc   : > { %v1903_v20 = vpop.f32.mrf.mxu1 }
 0x4bd   : > { %v1926_v28 = vcombine.low %v1815_v13, %v1903_v20  ;;  %v1927_v29 = vcombine.high %v1815_v13, %v1903_v20 }
 0x4be   : > { %v2612_v24 = vpop.f32.mrf.mxu1 }
 0x4bf   : > { %v1934_v34 = vrot.slane %v1926_v28, %v3209_v54  ;;  %v1941_v27 = vrot.slane %v1927_v29, %v3209_v54 }
 0x4c0   : > { %v1906_v25 = vpop.f32.mrf.mxu1 }
 0x4c1   : > { %v1994_v41 = vcombine.low %v1818_v44, %v1906_v25  ;;  %v1995_v42 = vcombine.high %v1818_v44, %v1906_v25  ;;  %v2770_v44 = vld [vmem:[#allocation7 + $0x8] sm:$0xff]  }
 0x4c2   : > { %v2613_v26 = vpop.f32.mrf.mxu1  ;;  %2627 = vmatpush3.bf16.msra.mxu0 %v2770_v44 }
 0x4c3   : > { %v2002_v35 = vrot.slane %v1994_v41, %v3209_v54  ;;  %v2009_v61 = vrot.slane %v1995_v42, %v3209_v54  ;;  %2628 = vmatprep.subr.bf16.mxu0 %v2964_v21 }
 0x4dd   : > { %v1859_v30 = vpop.f32.mrf.mxu0 }
 0x4de   : > { %v1910_v31 = vcombine.low %v1771_v12, %v1859_v30  ;;  %v1911_v32 = vcombine.high %v1771_v12, %v1859_v30 }
 0x4df   : > { %v2606_v23 = vpop.f32.mrf.mxu0 }
 0x4e0   : > { %v1918_v39 = vrot.slane %v1910_v31, %v3209_v54  ;;  %v1925_v40 = vrot.slane %v1911_v32, %v3209_v54 }
 0x4e1   : > { %v1862_v43 = vpop.f32.mrf.mxu0 }
 0x4e2   : > { %v1942_v33 = vcombine.low %v1918_v39, %v1934_v34  ;;  %v1943_v47 = vcombine.high %v1918_v39, %v1934_v34  ;;  %v1958_v48 = vcombine.low %v1925_v40, %v1941_v27  ;;  %v1959_v49 = vcombine.high %v1925_v40, %v1941_v27  ;;  %v2771_v39 = vld [vmem:[#allocation7] sm:$0xff]  }
 0x4e3   : > { %v1978_v50 = vcombine.low %v1774_v37, %v1862_v43  ;;  %v1979_v51 = vcombine.high %v1774_v37, %v1862_v43  ;;  %v2607_v52 = vpop.f32.mrf.mxu0  ;;  %2629 = vmatpush3.bf16.msra.mxu0 %v2771_v39 }
 0x4e4   : > { %v1950_v56 = vrot.slane %v1942_v33, %v3212_v60  ;;  %v1957_v57 = vrot.slane %v1943_v47, %v3212_v60  ;;  %v1966_v46 = vrot.slane %v1958_v48, %v3212_v60  ;;  %v1973_v59 = vrot.slane %v1959_v49, %v3212_v60 }
 0x4e5   : > { %v1986_v62 = vrot.slane %v1978_v50, %v3209_v54  ;;  %v1993_v0 = vrot.slane %v1979_v51, %v3209_v54 }
 0x4e6   : > { %v2046_v1 = vcombine.low %v1950_v56, %v1957_v57  ;;  %v2492_v22 = vcombine.high %v1950_v56, %v1957_v57  ;;  %v2062_v58 = vcombine.low %v1966_v46, %v1973_v59  ;;  %v2493_v2 = vcombine.high %v1966_v46, %v1973_v59 }
 0x4e7   : > { %v2010_v55 = vcombine.low %v1986_v62, %v2002_v35  ;;  %v2011_v63 = vcombine.high %v1986_v62, %v2002_v35  ;;  %v2026_v38 = vcombine.low %v1993_v0, %v2009_v61  ;;  %v2027_v3 = vcombine.high %v1993_v0, %v2009_v61 }
 0x4e8   : > { %v2053_v4 = vrot.slane %v2046_v1, %v3209_v54  ;;  %v2061_v5 = vrot.slane %v2492_v22, %v3209_v54  ;;  %v2069_v7 = vrot.slane %v2062_v58, %v3209_v54  ;;  %v2077_v9 = vrot.slane %v2493_v2, %v3209_v54 }
 0x4e9   : > { %v2018_v10 = vrot.slane %v2010_v55, %v3212_v60  ;;  %v2025_v11 = vrot.slane %v2011_v63, %v3212_v60  ;;  %v2034_v15 = vrot.slane %v2026_v38, %v3212_v60  ;;  %v2041_v6 = vrot.slane %v2027_v3, %v3212_v60  ;;  %v2496_v63 = vld [vmem:[%s3560_s4] ss:$0 sm:$0xff] }
 0x4ea   : > { %v2079_v8 = vcombine.high %v2053_v4, %v2061_v5  ;;  %v2095_v16 = vcombine.high %v2069_v7, %v2077_v9  ;;  %v2078_v17 = vcombine.low %v2053_v4, %v2061_v5  ;;  %v2094_v53 = vcombine.low %v2069_v7, %v2077_v9 }
 0x4eb   : > { %v2114_v14 = vcombine.low %v2018_v10, %v2025_v11  ;;  %v2494_v12 = vcombine.high %v2018_v10, %v2025_v11  ;;  %v2130_v13 = vcombine.low %v2034_v15, %v2041_v6  ;;  %v2495_v18 = vcombine.high %v2034_v15, %v2041_v6 }
 0x4ec   : > { %v2086_v36 = vrot.slane %v2078_v17, %v3212_v60  ;;  %v2102_v37 = vrot.slane %v2094_v53, %v3212_v60  ;;  %v2093_v25 = vrot.slane %v2079_v8, %v3212_v60  ;;  %v2109_v26 = vrot.slane %v2095_v16, %v3212_v60 }
 0x4ed   : > { %v2121_v19 = vrot.slane %v2114_v14, %v3209_v54  ;;  %v2129_v45 = vrot.slane %v2494_v12, %v3209_v54  ;;  %v2137_v20 = vrot.slane %v2130_v13, %v3209_v54  ;;  %v2145_v24 = vrot.slane %v2495_v18, %v3209_v54 }
 0x4ee   : > { %v2110_v28 = vcombine.low %v2086_v36, %v2102_v37  ;;  %v2112_v40 = vcombine.low %v2093_v25, %v2109_v26  ;;  %v2111_v42 = vcombine.high %v2086_v36, %v2102_v37  ;;  %v2113_v21 = vcombine.high %v2093_v25, %v2109_v26 }
 0x4ef   : > { %v2147_v29 = vcombine.high %v2121_v19, %v2129_v45  ;;  %v2163_v30 = vcombine.high %v2137_v20, %v2145_v24  ;;  %v2146_v31 = vcombine.low %v2121_v19, %v2129_v45  ;;  %v2162_v32 = vcombine.low %v2137_v20, %v2145_v24 }
 0x4f1   : > { %v2161_v23 = vrot.slane %v2147_v29, %v3212_v60  ;;  %v2177_v34 = vrot.slane %v2163_v30, %v3212_v60  ;;  %v2154_v27 = vrot.slane %v2146_v31, %v3212_v60  ;;  %v2170_v54 = vrot.slane %v2162_v32, %v3212_v60 }
 0x4f3   : > { %v2180_v41 = vcombine.low %v2161_v23, %v2177_v34  ;;  %v2179_v43 = vcombine.high %v2154_v27, %v2170_v54  ;;  %v2178_v33 = vcombine.low %v2154_v27, %v2170_v54  ;;  %v2181_v49 = vcombine.high %v2161_v23, %v2177_v34 }
 0x4f5   : > { %v2722_v47 = vpack.i.bf16 %v2180_v41, %v2112_v40  ;;  %v2717_v48 = vpack.i.bf16 %v2179_v43, %v2111_v42  ;;  %v2727_v50 = vpack.i.bf16 %v2181_v49, %v2113_v21 }
 0x4f7   : > { %2723 = vrot.lane.b32.xlu0 %v2722_v47, %s2966_s12  ;;  %2718 = vrot.lane.b32.xlu1 %v2717_v48, %s2967_s13 }
 0x4fb   : > { %2728 = vrot.lane.b32.xlu1 %v2727_v50, %s2965_s10 }
 0x569   : > { %v2724_v51 = vpop.permute.xlu0 %2723  ;;  %v2719_v60 = vpop.permute.xlu1 %2718 }
 0x56a   : > { %v2721_v52 = vunpack.i.h.bf16 %v2719_v60  ;;  %v2720_v56 = vunpack.i.l.bf16 %v2719_v60  ;;  %v2726_v57 = vunpack.i.h.bf16 %v2724_v51  ;;  %v2725_v46 = vunpack.i.l.bf16 %v2724_v51 }
 0x56c   : > { %v2206_v59 = vsel %vm1421_vm1, %v2110_v28, %v2720_v56  ;;  %v2207_v35 = vsel %vm1421_vm1, %v2178_v33, %v2721_v52 }
 0x56d   : > { %v2729_v61 = vpop.permute.xlu1 %2728  ;;  %v2209_v1 = vsel %vm2208_vm5, %v2206_v59, %v2725_v46  ;;  %v2210_v22 = vsel %vm2208_vm5, %v2207_v35, %v2726_v57 }
 0x56e   : > { %v2731_v62 = vunpack.i.h.bf16 %v2729_v61  ;;  %v2730_v0 = vunpack.i.l.bf16 %v2729_v61 }
 0x570   : > { %v2212_v58 = vsel %vm2211_vm6, %v2209_v1, %v2730_v0  ;;  %v2213_v2 = vsel %vm2211_vm6, %v2210_v22, %v2731_v62 }
 0x571   : > { %v2214_v55 = vpack.c.bf16 %v2213_v2, %v2212_v58 }
 0x573   : > { %2631 = vmatmul.mubr.bf16.vlgmr.msra.gmra.mxu0 %v2214_v55 }
 0x633   : > { %v2320_v38 = vpop.f32.mrf.mxu0 }
 0x634   : > { %v2321_v3 = vadd.f32 %v2496_v63, %v2320_v38 }
 0x635   : > { %v2632_v4 = vpop.f32.mrf.mxu0 }
 0x636   : > { %2327 = vst [vmem:[%s271_s8] sm:$0xff] %v2321_v3 }
 0x637   : > { %v2323_v5 = vpop.f32.mrf.mxu0 }
 0x638   : > { %v2324_v7 = vadd.f32 %v2496_v63, %v2323_v5 }
 0x639   : > { %v2633_v9 = vpop.f32.mrf.mxu0 }
 0x63a   : > { %2328 = vst [vmem:[%s271_s8 + $0x8] sm:$0xff] %v2324_v7 }
 0x63b   : > { %2897 = shalt.err (!%p2894_p9)
}
 0x63c   : > { %s2898_s10 = scalar_lea.hbm %s3513_s7, 256  ;;  %s2902_s14 = scalar_lea.hbm %s3561_s5, 512 }
 0x63d   : > { %p2899_p13 = scmp.ne.s32.totalorder %s3513_s7, %s2898_s10  ;;  %p2903_p4 = scmp.lt.s32.totalorder %s3513_s7, %s3561_s5 }
 0x63e   : > { %p2904_p8 = scmp.lt.s32.totalorder %s2902_s14, %s2898_s10 }
 0x63f   : > { %p2900_p5 = pnand %p2899_p13, %p3577_p10 }
 0x640   : > { %p2905_p7 = por %p2904_p8, %p2903_p4 }
 0x641   : > { %p2901_p0 = pneg %p2900_p5 }
 0x643   : > { %p2906_p11 = pnand %p2905_p7, %p2901_p0 }
 0x645   : > { %2909 = shalt.err (!%p2906_p11)
}
 0x646   : > { %s2972_s11 = smov 128   ;;  %s2973_s15 = smov 8  }
 0x647   : > { %2644 = dma.vmem_to_hbm [thread:$0]  (%p3577_p10), %s3508_s9, 256, %s3513_s7, %s2330_s27, %s2972_s11, %s2972_s11, %s2973_s15  }
 0x648 PF: > { %s2358_s16 = sand.u32 1, %s2940_s18   ;;  %p3578_p1 = scmp.ne.s32.totalorder %s3567_s25, 0 }
 0x649   : > { %p3579_p2 = scmp.ge.s32.totalorder %s2952_s21, 2  ;;  %s2359_s6 = scalar_lea.sflag [#allocation4], %s2358_s16 }
 0x64b   : > { %p2658_p6 = pnand %p3579_p2, %p3578_p1 }
 0x64d   : > { %p2659_p12 = pneg %p2658_p6 }
 0x64f   : > { %2935 = dma.done.wait (%p2659_p12), %s2359_s6, 256  }
 0x650   : > { %2937 = vsyncadd (%p2659_p12), %s2359_s6, 4294967040  ;;  %p19_p3 = scmp.ge.s32.totalorder %s3076_s17, 4   ;;  %s3580_s18 = smov %s2944_s19 }
 0x651   : > { %s3581_s19 = smov %s2948_s20  ;;  %s3582_s20 = smov %s3085_s28 }
 0x652   : > { %s3583_s21 = smov %s3076_s17  ;;  %21 = sbr.rel (!%p19_p3) target bundleno = 6 (0x6), region = 93 }
 0x657   :  { %2364 = vsyncpa [#allocation3], 1 }
 0x658   :  { %2366 = vsyncpa [#allocation3 + $0x1], 1 }
 0x659   :  { %2367 = vsyncpa [#allocation6], 1 }
 0x65a   :  { %2368 = vsyncpa [#allocation4], 1 }
 0x65b   :  { %2370 = vsyncpa [#allocation4 + $0x1], 1 }

</bundles_post_ra>
